<compile_context>
chip_gen: v7x
topology: tpu7x:2x2x1
jax: 0.10.0
libtpu: 0.0.40
codegen_flags: <defaults>
</compile_context>

<pallas_src>
import functools

import jax
import jax.numpy as jnp
from jax.experimental import pallas as pl
from jax.experimental.pallas import tpu as pltpu

LANE = 128  # TPU lane width; output feature dim is padded up to this.


def linear_kernel(xa_ref, wa_ref, o_ref):
    # xa: (B, K+1)   -- input with a trailing ones column (carries the bias)
    # wa: (K+1, Np)  -- W^T padded to Np=128 lanes, last row is the bias
    # o : (B, Np)    -- lane-dense f32 output
    xa = xa_ref[...].astype(jnp.float32)
    wa = wa_ref[...].astype(jnp.float32)
    kp1 = wa.shape[0]  # static at trace time (3 for MountainCar: K=2 + bias row)
    # Statically unrolled rank-1 updates on the VPU: (B,1)*(1,Np) -> (B,Np).
    acc = xa[:, 0:1] * wa[0:1, :]
    for k in range(1, kp1):
        acc = acc + xa[:, k:k + 1] * wa[k:k + 1, :]
    o_ref[...] = acc.astype(o_ref.dtype)


def pack_params(weight, bias, lane=LANE):
    """One-time parameter layout.

    weight: (out, in) in PyTorch nn.Linear convention; bias: (out,).
    Returns wa of shape (in + 1, Np) with Np a multiple of 128:
      rows 0..in-1 = W^T (zero-padded along lanes), row in = bias.
    """
    out_f, in_f = weight.shape
    n_pad = max(lane, ((out_f + lane - 1) // lane) * lane)
    wa = jnp.zeros((in_f + 1, n_pad), dtype=jnp.float32)
    wa = wa.at[:in_f, :out_f].set(jnp.asarray(weight, jnp.float32).T)
    wa = wa.at[in_f, :out_f].set(jnp.asarray(bias, jnp.float32))
    return wa


@functools.partial(jax.jit, static_argnames=("n_out",))
def linear_forward(x, wa, n_out):
    """x: (B, in); wa: (in+1, Np) packed weight+bias slab; returns (B, n_out)."""
    B = x.shape[0]
    kp1, n_pad = wa.shape
    # Append the ones column that activates the bias row of wa.
    xa = jnp.concatenate([x, jnp.ones((B, 1), dtype=x.dtype)], axis=1)

    cost = pl.CostEstimate(
        flops=2 * B * kp1 * n_pad,
        transcendentals=0,
        bytes_accessed=4 * (B * kp1 + kp1 * n_pad + B * n_pad),
    )

    out_padded = pl.pallas_call(
        linear_kernel,
        out_shape=jax.ShapeDtypeStruct((B, n_pad), jnp.float32),
        # No grid: single invocation, full (tiny) arrays pinned in VMEM.
        in_specs=[
            pl.BlockSpec(memory_space=pltpu.MemorySpace.VMEM),
            pl.BlockSpec(memory_space=pltpu.MemorySpace.VMEM),
        ],
        out_specs=pl.BlockSpec(memory_space=pltpu.MemorySpace.VMEM),
        cost_estimate=cost,
    )(xa, wa)

    # Slice the real logits back out; fuses into surrounding XLA (argmax etc.).
    return out_padded[:, :n_out].astype(x.dtype)


if __name__ == "__main__":
    # MountainCar-v0: observation dim = 2, action dim = 3
    input_size = 2
    output_size = 3
    batch = 8  # multiple of 8 (sublane-friendly)

    key = jax.random.PRNGKey(0)
    kx, kw, kb = jax.random.split(key, 3)

    # Deterministic init matching PyTorch's default nn.Linear convention.
    bound = 1.0 / (input_size ** 0.5)
    weight = jax.random.uniform(kw, (output_size, input_size),
                                minval=-bound, maxval=bound, dtype=jnp.float32)
    bias = jax.random.uniform(kb, (output_size,),
                              minval=-bound, maxval=bound, dtype=jnp.float32)
    x = jax.random.normal(kx, (batch, input_size), dtype=jnp.float32)

    # One-time, hoisted out of the per-call path.
    wa = pack_params(weight, bias)            # (in+1, 128)

    out = jax.block_until_ready(linear_forward(x, wa, output_size))

    # Reference: plain JAX, same math as torch nn.Linear forward.
    ref = x @ weight.T + bias
    assert out.shape == (batch, output_size)
    assert jnp.allclose(out, ref, atol=1e-5, rtol=1e-5)

    print("KERNEL_OK")
</pallas_src>

<mosaic_0001>
module attributes {stable_mosaic.version = 11 : i64} {
  func.func @linear_kernel(%arg0: memref<8x3xf32, #tpu.memory_space<vmem>>, %arg1: memref<3x128xf32, #tpu.memory_space<vmem>>, %arg2: memref<8x128xf32, #tpu.memory_space<vmem>>) attributes {dimension_semantics = [], scalar_prefetch = 0 : i64, scratch_operands = 0 : i64, tpu.core_type = #tpu.core_type<tc>} {
    %c0 = arith.constant 0 : index
    %c0_0 = arith.constant 0 : index
    %0 = vector.load %arg0[%c0, %c0_0] : memref<8x3xf32, #tpu.memory_space<vmem>>, vector<8x3xf32>
    %c0_1 = arith.constant 0 : index
    %c0_2 = arith.constant 0 : index
    %1 = vector.load %arg1[%c0_1, %c0_2] : memref<3x128xf32, #tpu.memory_space<vmem>>, vector<3x128xf32>
    %2 = vector.extract_strided_slice %0 {offsets = [0, 0], sizes = [8, 1], strides = [1, 1]} : vector<8x3xf32> to vector<8x1xf32>
    %3 = vector.extract_strided_slice %1 {offsets = [0, 0], sizes = [1, 128], strides = [1, 1]} : vector<3x128xf32> to vector<1x128xf32>
    %4 = vector.broadcast %2 : vector<8x1xf32> to vector<8x128xf32>
    %5 = vector.broadcast %3 : vector<1x128xf32> to vector<8x128xf32>
    %6 = arith.mulf %4, %5 : vector<8x128xf32>
    %7 = vector.extract_strided_slice %0 {offsets = [0, 1], sizes = [8, 1], strides = [1, 1]} : vector<8x3xf32> to vector<8x1xf32>
    %8 = vector.extract_strided_slice %1 {offsets = [1, 0], sizes = [1, 128], strides = [1, 1]} : vector<3x128xf32> to vector<1x128xf32>
    %9 = vector.broadcast %7 : vector<8x1xf32> to vector<8x128xf32>
    %10 = vector.broadcast %8 : vector<1x128xf32> to vector<8x128xf32>
    %11 = arith.mulf %9, %10 : vector<8x128xf32>
    %12 = arith.addf %6, %11 : vector<8x128xf32>
    %13 = vector.extract_strided_slice %0 {offsets = [0, 2], sizes = [8, 1], strides = [1, 1]} : vector<8x3xf32> to vector<8x1xf32>
    %14 = vector.extract_strided_slice %1 {offsets = [2, 0], sizes = [1, 128], strides = [1, 1]} : vector<3x128xf32> to vector<1x128xf32>
    %15 = vector.broadcast %13 : vector<8x1xf32> to vector<8x128xf32>
    %16 = vector.broadcast %14 : vector<1x128xf32> to vector<8x128xf32>
    %17 = arith.mulf %15, %16 : vector<8x128xf32>
    %18 = arith.addf %12, %17 : vector<8x128xf32>
    %c0_3 = arith.constant 0 : index
    %c0_4 = arith.constant 0 : index
    %19 = vector.load %arg2[%c0_3, %c0_4] : memref<8x128xf32, #tpu.memory_space<vmem>>, vector<8x128xf32>
    tpu.vector_store %arg2[%c0_3, %c0_4], %18 {strides = array<i32>} : memref<8x128xf32, #tpu.memory_space<vmem>>, vector<8x128xf32>,
    return
  }
}

</mosaic_0001>

<bundles_post_ra>
// kernel: linear_forward.1
= control target key start
LH: loop header
LB: loop body
LE: loop exit
PB: predicated region body
PF: predicated region fallthrough
CT: control target
= control target key end

     0   :  { %v55_v0 = vmov 0   ;;  %v56_v2 = vmov 2   ;;  %v57_v3 = vmov 1   ;;  %v18_v4 = vlaneseq  ;;  %s82_s0 = inlined_call_operand.vmem [shape: f32[8,3], index: 0, kind: input, shape index: {}]   ;;  %s83_s1 = inlined_call_operand.vmem [shape: f32[3,128], index: 1, kind: input, shape index: {}]   ;;  %s84_s2 = inlined_call_operand.vmem [shape: f32[8,128], index: 2, kind: output, shape index: {}]  }
   0x1   :  { %51 = vset.pattern.permute.xlu0 %v55_v0  ;;  %v11_v1 = vld [vmem:[%s82_s0] sm:$0xff]  ;;  %53 = vset.pattern.permute.xlu1 %v56_v2 }
   0x2   :  { %15 = vperm.xlu0 %51, %v11_v1   ;;  %34 = vperm.xlu1 %53, %v11_v1   ;;  %v19_v5 = vshrl.u32 %v18_v4, 7  ;;  %v12_v9 = vld [vmem:[%s83_s1] sm:$0x7] }
   0x4   :  { %v20_v6 = vsub.s32 0, %v19_v5  ;;  %v29_v7 = vsub.s32 1, %v19_v5  ;;  %v39_v8 = vsub.s32 2, %v19_v5 }
   0x6   :  { %52 = vset.pattern.permute.xlu0 %v57_v3  ;;  %v21_v11 = vrot.slane %v12_v9, %v20_v6  ;;  %v30_v12 = vrot.slane %v12_v9, %v29_v7  ;;  %v40_v13 = vrot.slane %v12_v9, %v39_v8 }
   0x7   :  { %24 = vperm.xlu0 %52, %v11_v1  }
   0xb   :  { %54 = vset.pattern.permute.xlu0 %v56_v2 }
  0x81   :  { %v16_v10 = vpop.permute.xlu0 %15  ;;  %v35_v14 = vpop.permute.xlu1 %34 }
  0x82   :  { %v22_v16 = vmul.f32 %v21_v11, %v16_v10  ;;  %v41_v18 = vmul.f32 %v40_v13, %v35_v14 }
  0x86   :  { %v25_v15 = vpop.permute.xlu0 %24 }
  0x87   :  { %v31_v17 = vmul.f32 %v30_v12, %v25_v15 }
  0x89   :  { %v32_v19 = vadd.f32 %v31_v17, %v22_v16 }
  0x8b   :  { %v42_v20 = vadd.f32 %v41_v18, %v32_v19 }
  0x8d   :  { %43 = vst [vmem:[%s84_s2] sm:$0xff] %v42_v20 }

</bundles_post_ra>
